<compile_context>
chip_gen: v7x
topology: tpu7x:2x2x1
jax: 0.10.0
libtpu: 0.0.40
codegen_flags: <defaults>
</compile_context>

<pallas_src>
import jax
import jax.numpy as jnp
from jax import lax
from jax.experimental import pallas as pl
from jax.experimental.pallas import tpu as pltpu


def _self_attention_kernel(x_ref, w1_ref, w2_ref, o_ref):
    # x_ref : (TB, S, D)  -- TB batches handled by this grid step
    # w1_ref: (D, H)      -- layer1 weight, pre-transposed (y = x @ w1)
    # w2_ref: (H, O)      -- layer2 weight, pre-transposed (y = h @ w2)
    # o_ref : (TB, O, S)  -- softmax over S, already in the final layout
    TB, S, D = x_ref.shape
    H, O = w2_ref.shape

    # Fold the TB batches into the matmul M dimension.  S is the sublane axis,
    # so merging the two leading dims is a pure leading-dim collapse (no lane
    # tile is split; free when S is a multiple of 8).
    x = x_ref[...].reshape(TB * S, D)                     # (M, D), M = TB*S

    # layer1 + tanh: a single MXU pass over all folded rows, f32 accumulation.
    # (At large M the 1-wide EUP tanh -- not the MXU -- is the binding unit.)
    h = jnp.tanh(
        jnp.dot(x, w1_ref[...], preferred_element_type=jnp.float32)
    )                                                     # (M, H) f32

    # layer2, emitted transposed: (O, M) == (h @ w2)^T straight off the MXU,
    # so the softmax axis (S) is already the lane axis -- no score transpose.
    logits = lax.dot_general(
        w2_ref[...], h,
        dimension_numbers=(((0,), (1,)), ((), ())),
        preferred_element_type=jnp.float32,
    )                                                     # (O, M) f32

    # Per-batch softmax over S, stored straight into the final (TB, O, S)
    # layout.  TB is a small static constant, so this loop fully unrolls at
    # trace time and every slice is a static whole-lane-range slice (avoids
    # the lane-splitting (O, TB*S) -> (O, TB, S) reshape).  For large folded
    # TB one would pad S to a lane tile and vectorize this instead.
    for b in range(TB):
        lg = logits[:, b * S:(b + 1) * S]                 # (O, S)
        m = jnp.max(lg, axis=-1, keepdims=True)
        e = jnp.exp(lg - m)
        sm = e / jnp.sum(e, axis=-1, keepdims=True)       # rows sum to 1 exactly
        o_ref[b] = sm.astype(o_ref.dtype)


def _num_tensorcores():
    """Best-effort TensorCore count (v7x has 2 per chip; v5e/v6e have 1)."""
    try:
        info = pltpu.get_tpu_info()
    except Exception:
        return 1
    for name in ("num_cores", "num_tensorcores", "tensorcore_count", "core_count"):
        n = getattr(info, name, None)
        if n:
            try:
                return int(n)
            except (TypeError, ValueError):
                pass
    return 1


def _default_num_steps(B, S):
    # A >1 grid only pays on multi-TensorCore parts (v7x), and only when each
    # step still gives the MXU a tall M (>= ~512 rows -> lane-dense stores);
    # otherwise it is a sequential loop adding ~0.35 us/step of pipeline
    # overhead on single-TC v5e/v6e.
    if _num_tensorcores() >= 2 and B % 2 == 0 and (B // 2) * S >= 512:
        return 2
    return 1


def self_attention(x, w1_t, w2_t, *, num_steps=None):
    """x: (B, S, D); w1_t: (D, H); w2_t: (H, O).  Returns (B, O, S) float32."""
    B, S, D = x.shape
    H = w1_t.shape[1]
    O = w2_t.shape[1]

    if num_steps is None:
        num_steps = _default_num_steps(B, S)
    assert B % num_steps == 0, (B, num_steps)
    TB = B // num_steps                               # batches folded per step

    itemsize = jnp.dtype(x.dtype).itemsize
    cost = pl.CostEstimate(
        flops=2 * B * S * (D * H + H * O),
        transcendentals=B * S * H + B * O * S,        # tanh + softmax exp
        bytes_accessed=(B * S * D + D * H + H * O) * itemsize + B * O * S * 4,
    )

    return pl.pallas_call(
        _self_attention_kernel,
        out_shape=jax.ShapeDtypeStruct((B, O, S), jnp.float32),
        grid_spec=pltpu.PrefetchScalarGridSpec(
            num_scalar_prefetch=0,
            grid=(num_steps,),
            in_specs=[
                pl.BlockSpec((TB, S, D), lambda g: (g, 0, 0)),
                # Constant index maps -> weights stay VMEM-resident across steps.
                pl.BlockSpec((D, H), lambda g: (0, 0)),
                pl.BlockSpec((H, O), lambda g: (0, 0)),
            ],
            out_specs=pl.BlockSpec((TB, O, S), lambda g: (g, 0, 0)),
        ),
        compiler_params=pltpu.CompilerParams(
            dimension_semantics=("parallel",),
            # VMEM is ample at these shapes; at very large folded M (esp. on
            # v7x's 64 MiB VMEM) raise vmem_limit_bytes and/or num_steps.
        ),
        cost_estimate=cost,
    )(x, w1_t, w2_t)


def reference_self_attention(x, w1_t, w2_t):
    """Pure-JAX f32 reference matching the PyTorch module."""
    h = jnp.tanh(jnp.einsum("bsd,dh->bsh", x, w1_t))
    s = jnp.einsum("bsh,ho->bso", h, w2_t)
    logits = jnp.transpose(s, (0, 2, 1))              # (B, O, S)
    return jax.nn.softmax(logits, axis=2)


if __name__ == "__main__":
    # Small shapes consistent with the module:
    #   batch=2, seq=8, input_size=32, hidden_size=32, output_size=8
    B, S, input_size, hidden_size, output_size = 2, 8, 32, 32, 8

    key = jax.random.PRNGKey(0)
    kx, k1, k2 = jax.random.split(key, 3)

    x = jax.random.normal(kx, (B, S, input_size), dtype=jnp.float32)

    # nn.Linear(in, out, bias=False) weight shape is (out, in); y = x @ W^T.
    # Transpose once here (outside the hot path) and pass (in, out) weights.
    w1 = jax.random.normal(k1, (hidden_size, input_size), dtype=jnp.float32) * 0.1
    w2 = jax.random.normal(k2, (output_size, hidden_size), dtype=jnp.float32) * 0.1
    w1_t = jnp.transpose(w1)   # (input_size, hidden_size)
    w2_t = jnp.transpose(w2)   # (hidden_size, output_size)

    out = self_attention(x, w1_t, w2_t)
    jax.block_until_ready(out)

    ref = reference_self_attention(x, w1_t, w2_t)
    assert out.shape == (B, output_size, S), out.shape
    # Kernel math is f32 end-to-end with exact softmax normalization.
    assert jnp.allclose(out, ref, atol=1e-5, rtol=1e-5), (
        "mismatch vs reference; max abs err = "
        f"{float(jnp.max(jnp.abs(out - ref)))}"
    )

    print("KERNEL_OK")
</pallas_src>

<mosaic_0001>
module attributes {stable_mosaic.version = 11 : i64} {
  func.func @_self_attention_kernel(%arg0: i32, %arg1: memref<2x8x32xf32, #tpu.memory_space<vmem>>, %arg2: memref<32x32xf32, #tpu.memory_space<vmem>>, %arg3: memref<32x8xf32, #tpu.memory_space<vmem>>, %arg4: memref<2x8x8xf32, #tpu.memory_space<vmem>>) attributes {dimension_semantics = [#tpu.dimension_semantics<parallel>], iteration_bounds = array<i64: 1>, scalar_prefetch = 0 : i64, scratch_operands = 0 : i64, tpu.core_type = #tpu.core_type<tc>, window_params = [{transform_indices = @transform_0, window_bounds = array<i64: 2, 8, 32>}, {pipeline_mode = #tpu.pipeline_mode<synchronous>, transform_indices = @transform_1, window_bounds = array<i64: 32, 32>}, {pipeline_mode = #tpu.pipeline_mode<synchronous>, transform_indices = @transform_2, window_bounds = array<i64: 32, 8>}, {transform_indices = @transform_3, window_bounds = array<i64: 2, 8, 8>}]} {
    %c0 = arith.constant 0 : index
    %c0_0 = arith.constant 0 : index
    %c0_1 = arith.constant 0 : index
    %0 = vector.load %arg1[%c0, %c0_0, %c0_1] : memref<2x8x32xf32, #tpu.memory_space<vmem>>, vector<2x8x32xf32>
    %1 = vector.shape_cast %0 : vector<2x8x32xf32> to vector<16x32xf32>
    %c0_2 = arith.constant 0 : index
    %c0_3 = arith.constant 0 : index
    %2 = vector.load %arg2[%c0_2, %c0_3] : memref<32x32xf32, #tpu.memory_space<vmem>>, vector<32x32xf32>
    %cst = arith.constant dense<0.000000e+00> : vector<16x32xf32>
    %3 = tpu.matmul %1, %2, %cst {dimension_numbers = #tpu.dot_dimension_numbers<[1], [0], [0], [1], [0, 0, 1, 1], [], []>} : vector<16x32xf32>, vector<32x32xf32>, vector<16x32xf32> -> vector<16x32xf32>
    %4 = math.tanh %3 : vector<16x32xf32>
    %c0_4 = arith.constant 0 : index
    %c0_5 = arith.constant 0 : index
    %5 = vector.load %arg3[%c0_4, %c0_5] : memref<32x8xf32, #tpu.memory_space<vmem>>, vector<32x8xf32>
    %cst_6 = arith.constant dense<0.000000e+00> : vector<8x16xf32>
    %6 = tpu.matmul %5, %4, %cst_6 {dimension_numbers = #tpu.dot_dimension_numbers<[0], [1], [1], [0], [0, 1, 1, 0], [], []>} : vector<32x8xf32>, vector<16x32xf32>, vector<8x16xf32> -> vector<8x16xf32>
    %7 = vector.extract_strided_slice %6 {offsets = [0, 0], sizes = [8, 8], strides = [1, 1]} : vector<8x16xf32> to vector<8x8xf32>
    %cst_7 = arith.constant dense<0xFF800000> : vector<8xf32>
    %8 = vector.multi_reduction <maximumf>, %7, %cst_7 [1] : vector<8x8xf32> to vector<8xf32>
    %9 = vector.shape_cast %8 : vector<8xf32> to vector<8x1xf32>
    %10 = vector.broadcast %9 : vector<8x1xf32> to vector<8x8xf32>
    %11 = arith.subf %7, %10 : vector<8x8xf32>
    %12 = math.exp %11 : vector<8x8xf32>
    %cst_8 = arith.constant dense<0.000000e+00> : vector<8xf32>
    %13 = vector.multi_reduction <add>, %12, %cst_8 [1] : vector<8x8xf32> to vector<8xf32>
    %14 = vector.shape_cast %13 : vector<8xf32> to vector<8x1xf32>
    %15 = vector.broadcast %14 : vector<8x1xf32> to vector<8x8xf32>
    %16 = arith.divf %12, %15 : vector<8x8xf32>
    %c0_9 = arith.constant 0 : index
    %c0_10 = arith.constant 0 : index
    %c0_11 = arith.constant 0 : index
    %17 = vector.load %arg4[%c0_9, %c0_10, %c0_11] : memref<2x8x8xf32, #tpu.memory_space<vmem>>, vector<1x8x8xf32>
    %18 = vector.shape_cast %17 : vector<1x8x8xf32> to vector<8x8xf32>
    %19 = vector.shape_cast %16 : vector<8x8xf32> to vector<1x8x8xf32>
    tpu.vector_store %arg4[%c0_9, %c0_10, %c0_11], %19 {strides = array<i32>} : memref<2x8x8xf32, #tpu.memory_space<vmem>>, vector<1x8x8xf32>,
    %20 = vector.extract_strided_slice %6 {offsets = [0, 8], sizes = [8, 8], strides = [1, 1]} : vector<8x16xf32> to vector<8x8xf32>
    %cst_12 = arith.constant dense<0xFF800000> : vector<8xf32>
    %21 = vector.multi_reduction <maximumf>, %20, %cst_12 [1] : vector<8x8xf32> to vector<8xf32>
    %22 = vector.shape_cast %21 : vector<8xf32> to vector<8x1xf32>
    %23 = vector.broadcast %22 : vector<8x1xf32> to vector<8x8xf32>
    %24 = arith.subf %20, %23 : vector<8x8xf32>
    %25 = math.exp %24 : vector<8x8xf32>
    %cst_13 = arith.constant dense<0.000000e+00> : vector<8xf32>
    %26 = vector.multi_reduction <add>, %25, %cst_13 [1] : vector<8x8xf32> to vector<8xf32>
    %27 = vector.shape_cast %26 : vector<8xf32> to vector<8x1xf32>
    %28 = vector.broadcast %27 : vector<8x1xf32> to vector<8x8xf32>
    %29 = arith.divf %25, %28 : vector<8x8xf32>
    %c1 = arith.constant 1 : index
    %c0_14 = arith.constant 0 : index
    %c0_15 = arith.constant 0 : index
    %30 = vector.load %arg4[%c1, %c0_14, %c0_15] : memref<2x8x8xf32, #tpu.memory_space<vmem>>, vector<1x8x8xf32>
    %31 = vector.shape_cast %30 : vector<1x8x8xf32> to vector<8x8xf32>
    %32 = vector.shape_cast %29 : vector<8x8xf32> to vector<1x8x8xf32>
    tpu.vector_store %arg4[%c1, %c0_14, %c0_15], %32 {strides = array<i32>} : memref<2x8x8xf32, #tpu.memory_space<vmem>>, vector<1x8x8xf32>,
    return
  }
  func.func @transform_0(%arg0: i32) -> (i32, i32, i32) {
    %c0_i32 = arith.constant 0 : i32
    %c0_i32_0 = arith.constant 0 : i32
    %c0_i32_1 = arith.constant 0 : i32
    return %arg0, %c0_i32, %c0_i32_0 : i32, i32, i32
  }
  func.func @transform_1(%arg0: i32) -> (i32, i32) {
    %c0_i32 = arith.constant 0 : i32
    %c0_i32_0 = arith.constant 0 : i32
    %c0_i32_1 = arith.constant 0 : i32
    return %c0_i32, %c0_i32_0 : i32, i32
  }
  func.func @transform_2(%arg0: i32) -> (i32, i32) {
    %c0_i32 = arith.constant 0 : i32
    %c0_i32_0 = arith.constant 0 : i32
    %c0_i32_1 = arith.constant 0 : i32
    return %c0_i32, %c0_i32_0 : i32, i32
  }
  func.func @transform_3(%arg0: i32) -> (i32, i32, i32) {
    %c0_i32 = arith.constant 0 : i32
    %c0_i32_0 = arith.constant 0 : i32
    %c0_i32_1 = arith.constant 0 : i32
    return %arg0, %c0_i32, %c0_i32_0 : i32, i32, i32
  }
}

</mosaic_0001>

<bundles_post_ra>
// kernel: tpu_custom_call.1
= control target key start
LH: loop header
LB: loop body
LE: loop exit
PB: predicated region body
PF: predicated region fallthrough
CT: control target
= control target key end

     0   :  { %8 = vsyncpa [#allocation3], 0  ;;  %s490_s0 = inlined_call_operand.hbm [shape: f32[2,8,32], index: 0, kind: input, shape index: {}]   ;;  %s491_s1 = inlined_call_operand.vmem [shape: f32[32,32], index: 1, kind: input, shape index: {}]   ;;  %s492_s2 = inlined_call_operand.vmem [shape: f32[32,8], index: 2, kind: input, shape index: {}]   ;;  %s493_s3 = inlined_call_operand.hbm [shape: f32[2,8,8], index: 3, kind: output, shape index: {}]  }
   0x1   :  { %9 = vsyncpa [#allocation4], 0  ;;  %s398_s12 = smov [#allocation2]   ;;  %s350_s16 = scalar_lea.hbm %s490_s0, 256 }
   0x2   :  { %s15_s13 = sshll.u32 %s398_s12, 4  ;;  %p351_p0 = scmp.ne.s32.totalorder %s490_s0, %s350_s16  ;;  %s16_s13 = int_to_ptr.vmem [resolvable:$true] %s15_s13 }
   0x3   :  { %p354_p1 = scmp.lt.u32.totalorder %s350_s16, %s490_s0 }
   0x5   :  { %p356_p2 = pnand %p354_p1, %p351_p0 }
   0x7   :  { %359 = shalt.err (!%p356_p2)
}
   0x8   :  { %s360_s21 = scalar_lea.vmem %s16_s13, 256  ;;  %p365_p4 = scmp.lt.s32.totalorder %s16_s13, %s16_s13 }
   0x9   :  { %p361_p3 = scmp.ne.s32.totalorder %s16_s13, %s360_s21  ;;  %p366_p5 = scmp.lt.s32.totalorder %s360_s21, %s360_s21 }
   0xb   :  { %p367_p6 = por %p366_p5, %p365_p4 }
   0xd   :  { %p368_p7 = pnand %p367_p6, %p361_p3 }
   0xf   :  { %371 = shalt.err (!%p368_p7)
}
  0x10   :  { %s399_s22 = smov 128   ;;  %s400_s23 = smov 8  }
  0x11   :  { %21 = dma.hbm_to_vmem [thread:$0]  %s490_s0, 256, %s16_s13, [#allocation3], %s399_s22, %s399_s22, %s400_s23  }
  0x12   :  { %394 = dma.done.wait [#allocation3], 256  }
  0x13   :  { %395 = vsyncadd [#allocation3], 4294967040  ;;  %vm35_vm0 = vcmask 261120   ;;  %v31_v0 = vld [vmem:[%s491_s1] sm:$0xff]  ;;  %v32_v1 = vld [vmem:[%s491_s1 + $0x8] sm:$0xff]  ;;  %v401_v12 = vmov 0.0|0.0  }
  0x14   :  { %v33_v2 = vld [vmem:[%s491_s1 + $0x10] sm:$0xff]  ;;  %v318_v3 = vpack.c.bf16 %v32_v1, %v31_v0  ;;  %v34_v4 = vld [vmem:[%s491_s1 + $0x18] sm:$0xff]  ;;  %v29_v5 = vld [vmem:[#allocation2] sm:$0xff]  ;;  %326 = vmatprep.subr.bf16.mxu1 %v401_v12  ;;  %vm402_vm1 = vmmov 0   ;;  %v403_v13 = vmov 0.0   ;;  %vm247_vm3 = vcmask 130112  }
  0x15   :  { %v322_v6 = vpack.c.bf16 %v34_v4, %v33_v2  ;;  %308 = vmatprep.mubr.msk.f32.mxu0 %vm35_vm0, %v29_v5  ;;  %v119_v7 = vld [vmem:[%s492_s2] sm:$0xff]  ;;  %v120_v8 = vld [vmem:[%s492_s2 + $0x8] sm:$0xff]  ;;  %v121_v10 = vld [vmem:[%s492_s2 + $0x10] sm:$0xff]  ;;  %315 = vmatprep.mubr.msk.f32.mxu1 %vm402_vm1, %v403_v13  ;;  %vm234_vm4 = vcmask 64512   ;;  %s405_s13 = smov [#allocation5]  }
  0x16   :  { %319 = vmatprep.subr.bf16.mxu0 %v318_v3  ;;  %123 = vxpose.xlu0.b32.start [1/4] (short) (narrow) %v119_v7, 8  ;;  %v30_v9 = vld [vmem:[#allocation2 + $0x8] sm:$0xff]  ;;  %v122_v11 = vld [vmem:[%s492_s2 + $0x18] sm:$0xff]  ;;  %vm328_vm2 = vmpackc.low %vm35_vm0, %vm35_vm0  ;;  %s404_s2 = smov 120   ;;  %s274_s14 = sshll.u32 %s405_s13, 4  ;;  %s275_s14 = int_to_ptr.vmem [resolvable:$true] %s274_s14 }
  0x17   :  { %321 = vmatpush3.bf16.msra.mxu0 %v318_v3  ;;  %s372_s15 = scalar_lea.vmem %s275_s14, 256  ;;  %p377_p9 = scmp.lt.s32.totalorder %s275_s14, %s275_s14 }
  0x18   :  { %323 = vmatprep.subr.bf16.mxu0 %v322_v6  ;;  %p373_p8 = scmp.ne.s32.totalorder %s275_s14, %s372_s15  ;;  %p378_p10 = scmp.lt.s32.totalorder %s372_s15, %s372_s15 }
  0x1a   :  { %124 = vxpose.xlu0.b32.cont [2/4] (short) (narrow) %v120_v8, 8  ;;  %p379_p11 = por %p378_p10, %p377_p9 }
  0x1b   :  { %325 = vmatpush3.bf16.msra.mxu0 %v322_v6 }
  0x1c   :  { %p380_p12 = pnand %p379_p11, %p373_p8 }
  0x1e   :  { %309 = vmatmul.mubr.msk.f32.vlgmr.msra.gmra.mrb[0].mxu0 %vm35_vm0, %v30_v9  ;;  %125 = vxpose.xlu0.b32.cont [3/4] (short) (narrow) %v121_v10, 8 }
  0x22   :  { %126 = vxpose.xlu0.b32.end [4/4] (short) (narrow) %v122_v11, 8 }
  0x96   :  { %v139_v19 = vpop.trf.xlu0 }
  0xf1   :  { %v310_v14 = vpop.f32.mrb[0].mxu0 }
  0xf2   :  { %338 = vtanh.f32 %v310_v14  ;;  %v108_v15 = vpop.f32.mrb[1].mxu0 }
  0xf3   :  { %340 = vtanh.f32 %v108_v15 }
  0xfc   :  { %v339_v16 = vpop.eup %338 }
  0xfd   :  { %v341_v17 = vpop.eup %340 }
  0xfe   :  { %v327_v18 = vpack.c.bf16 %v339_v16, %v341_v17 }
 0x100   :  { %329 = vmatpush3.bf16.xpose.msk.msra.mxu1 %vm328_vm2, %v327_v18 }
 0x107   :  { %316 = vmatmul.mubr.msk.f32.vlgmr.msra.gmra.mrb[0].mxu1 %vm35_vm0, %v139_v19 }
 0x1da   :  { %v230_v20 = vpop.f32.mrb[0].mxu1 }
 0x1db   :  { %v317_v21 = vpop.f32.mrb[1].mxu1  ;;  %v248_v22 = vsel %vm247_vm3, %v230_v20, -inf  ;;  %v235_v23 = vsel %vm234_vm4, %v230_v20, -inf }
 0x1dc   :  { %249 = vmax.xlane.f32.xlu1 %v248_v22  ;;  %236 = vmax.xlane.f32.xlu0 %v235_v23 }
 0x269   :  { %v250_v24 = vpop.xlane.xlu1 %249  ;;  %v237_v28 = vpop.xlane.xlu0 %236 }
 0x26a   :  { %v251_v25 = vsub.f32 %v230_v20, %v250_v24  ;;  %v238_v29 = vsub.f32 %v230_v20, %v237_v28 }
 0x26c   :  { %v252_v26 = vmul.f32 1.442695, %v251_v25  ;;  %v239_v30 = vmul.f32 1.442695, %v238_v29 }
 0x26e   :  { %342 = vpow2.f32 %v252_v26 }
 0x26f   :  { %344 = vpow2.f32 %v239_v30 }
 0x278   :  { %v343_v27 = vpop.eup %342 }
 0x279   :  { %255 = vrot.lane.b32.xlu1 %v343_v27, %s404_s2  ;;  %v345_v33 = vpop.eup %344 }
 0x27a   :  { %v241_v34 = vsel %vm234_vm4, %v345_v33, 0.0 }
 0x2eb   :  { %v256_v31 = vpop.permute.xlu1 %255 }
 0x2ec   :  { %v258_v32 = vsel %vm234_vm4, %v256_v31, 0.0 }
 0x2ed   :  { %259 = vadd.xlane.f32.xlu1 %v258_v32 }
 0x2f1   :  { %242 = vadd.xlane.f32.xlu1 %v241_v34 }
 0x37a   :  { %v260_v35 = vpop.xlane.xlu1 %259 }
 0x37b   :  { %346 = vrcp.f32 %v260_v35 }
 0x37e   :  { %v243_v36 = vpop.xlane.xlu1 %242 }
 0x37f   :  { %348 = vrcp.f32 %v243_v36 }
 0x385   :  { %v347_v37 = vpop.eup %346 }
 0x386   :  { %v262_v38 = vmul.f32 %v347_v37, %v343_v27 }
 0x388   :  { %264 = vrot.lane.b32.xlu0 %v262_v38, %s404_s2 }
 0x389   :  { %v349_v39 = vpop.eup %348 }
 0x38a   :  { %v245_v40 = vmul.f32 %v349_v39, %v345_v33 }
 0x38c   :  { %246 = vst.msk [vmem:[#allocation5] sm:$0xff] %vm234_vm4, %v245_v40 }
 0x3fa   :  { %v265_v41 = vpop.permute.xlu0 %264 }
 0x3fb   :  { %268 = vst.msk [vmem:[#allocation5 + $0x8] sm:$0xff] %vm234_vm4, %v265_v41 }
 0x3fc   :  { %383 = shalt.err (!%p380_p12)
}
 0x3fd   :  { %s384_s18 = scalar_lea.hbm %s493_s3, 256 }
 0x3fe   :  { %p385_p13 = scmp.ne.s32.totalorder %s493_s3, %s384_s18  ;;  %p388_p0 = scmp.lt.u32.totalorder %s384_s18, %s493_s3 }
 0x400   :  { %p390_p1 = pnand %p388_p0, %p385_p13 }
 0x402   :  { %393 = shalt.err (!%p390_p1)
}
 0x403   :  { %280 = dma.vmem_to_hbm [thread:$0]  %s275_s14, 256, %s493_s3, [#allocation4], %s399_s22, %s399_s22, %s400_s23  }
 0x404   :  { %396 = dma.done.wait [#allocation4], 256  }
 0x405   :  { %397 = vsyncadd [#allocation4], 4294967040 }
 0x406   :  { %284 = vsyncpa [#allocation3], 1 }
 0x407   :  { %285 = vsyncpa [#allocation4], 1 }

</bundles_post_ra>
